<compile_context>
chip_gen: v7x
topology: tpu7x:2x2x1
jax: 0.10.0
libtpu: 0.0.40
codegen_flags: <defaults>
</compile_context>

<pallas_src>
import jax
import jax.numpy as jnp
from jax.experimental import pallas as pl
from jax.experimental.pallas import tpu as pltpu


def _rotary_attn_kernel(x_ref, wqe_ref, wqo_ref, bqe_ref, bqo_ref,
                        woe_ref, woo_ref, bo_ref, cos_ref, sin_ref, o_ref):
    """One row tile of (b,s) rows per grid step.

    x_ref:   (TM, H*D)      flattened activations, row = b*S + s
    wqe_ref: (H*D, H*D//2)  block-diag Wq^T, even output features per head
    wqo_ref: (H*D, H*D//2)  block-diag Wq^T, odd output features per head
    bqe/bqo: (1, H*D//2)    matching bias halves (tiled over heads)
    woe_ref: (H*D//2, H*D)  block-diag Wo^T, even input rows per head
    woo_ref: (H*D//2, H*D)  block-diag Wo^T, odd input rows per head
    bo_ref:  (1, H*D)       bo tiled over heads
    cos/sin: (TM, H*D//2)   rotary tables, rows match this tile's s = row % S
    o_ref:   (TM, H*D)      output (lane-dense)
    """
    x = x_ref[...]                                                  # (TM, H*D)

    # q projection (MXU), already split into even / odd rotary features.
    qe = jnp.dot(x, wqe_ref[...], preferred_element_type=jnp.float32) + bqe_ref[...]
    qo = jnp.dot(x, wqo_ref[...], preferred_element_type=jnp.float32) + bqo_ref[...]

    cos = cos_ref[...]
    sin = sin_ref[...]
    # complex multiply (qe + i*qo) * (cos + i*sin)
    qe_rot = qe * cos - qo * sin
    qo_rot = qe * sin + qo * cos

    # output projection: contraction split over even/odd halves -> no lane
    # re-interleave needed; both dots accumulate into one f32 result.
    out = (jnp.dot(qe_rot, woe_ref[...], preferred_element_type=jnp.float32)
           + jnp.dot(qo_rot, woo_ref[...], preferred_element_type=jnp.float32)
           + bo_ref[...])

    o_ref[...] = out.astype(o_ref.dtype)


def _block_diag(m, h):
    """(a, b) -> (h*a, h*b) block-diagonal with `m` repeated on the diagonal."""
    a, b = m.shape
    eye = jnp.eye(h, dtype=m.dtype)
    return (eye[:, None, :, None] * m[None, :, None, :]).reshape(h * a, h * b)


def _pick_row_tile(rows, seq, target):
    """Largest tile <= target that divides `rows`, is sublane-friendly, and is
    commensurate with the seq-period of the rotary table."""
    for tm in range(min(rows, target), 0, -1):
        if rows % tm:
            continue
        if tm % 8 and tm != rows:
            continue
        if seq % tm == 0 or tm % seq == 0:
            return tm
    return rows


def rotary_attention_forward(x, Wq, bq, Wo, bo):
    """x: (B, S, H, D) float32.  Wq/Wo: (D, D) in PyTorch (out, in) layout."""
    B, S, H, D = x.shape
    assert D % 2 == 0
    half = D // 2
    HD = H * D
    Hh = H * half
    rows = B * S

    # --- fold heads + rotary even/odd split into the (resident) weights ------
    WqT = Wq.T                                        # (in, out)
    wqe = _block_diag(WqT[:, 0::2], H)                # (H*D, H*half)
    wqo = _block_diag(WqT[:, 1::2], H)                # (H*D, H*half)
    bqe = jnp.tile(bq[0::2], H)[None, :]              # (1, H*half)
    bqo = jnp.tile(bq[1::2], H)[None, :]

    WoT = Wo.T
    woe = _block_diag(WoT[0::2, :], H)                # (H*half, H*D)
    woo = _block_diag(WoT[1::2, :], H)
    bo2 = jnp.tile(bo, H)[None, :]                    # (1, H*D)

    # --- rotary tables (precompute_freqs_cis, theta=10000), tiled over heads -
    inv_freq = 1.0 / (10000.0 ** (jnp.arange(0, D, 2, dtype=jnp.float32) / D))
    ang = jnp.outer(jnp.arange(S, dtype=jnp.float32), inv_freq)   # (S, half)
    cos = jnp.tile(jnp.cos(ang), (1, H))              # (S, H*half), cols (h, j)
    sin = jnp.tile(jnp.sin(ang), (1, H))

    # --- activations: pure reshape, no transpose / extra HBM round trip ------
    x2 = x.reshape(rows, HD)                          # row = b*S + s

    # Row-tile size: big (amortize per-step overhead) but at least 2 tiles when
    # possible so v7x's two TensorCores both get work.
    target = max(8, min(1024, rows // 2))
    tm = _pick_row_tile(rows, S, target)

    # Rotary tables repeat with period S along rows; present them as an array
    # whose row count is a multiple of the tile so a wrapping index_map works.
    if tm > S:
        reps = tm // S
        cos = jnp.tile(cos, (reps, 1))
        sin = jnp.tile(sin, (reps, 1))
    n_cs = cos.shape[0] // tm                         # blocks in the table

    grid = (rows // tm,)

    out2 = pl.pallas_call(
        _rotary_attn_kernel,
        out_shape=jax.ShapeDtypeStruct((rows, HD), x.dtype),
        grid=grid,
        in_specs=[
            pl.BlockSpec((tm, HD), lambda i: (i, 0)),          # x tile
            pl.BlockSpec((HD, Hh), lambda i: (0, 0)),          # wq even (resident)
            pl.BlockSpec((HD, Hh), lambda i: (0, 0)),          # wq odd  (resident)
            pl.BlockSpec((1, Hh), lambda i: (0, 0)),           # bq even
            pl.BlockSpec((1, Hh), lambda i: (0, 0)),           # bq odd
            pl.BlockSpec((Hh, HD), lambda i: (0, 0)),          # wo even (resident)
            pl.BlockSpec((Hh, HD), lambda i: (0, 0)),          # wo odd  (resident)
            pl.BlockSpec((1, HD), lambda i: (0, 0)),           # bo
            pl.BlockSpec((tm, Hh), lambda i: (i % n_cs, 0)),   # cos
            pl.BlockSpec((tm, Hh), lambda i: (i % n_cs, 0)),   # sin
        ],
        out_specs=pl.BlockSpec((tm, HD), lambda i: (i, 0)),
        compiler_params=pltpu.CompilerParams(
            dimension_semantics=("parallel",)),
    )(x2, wqe, wqo, bqe, bqo, woe, woo, bo2, cos, sin)

    # Pure reshape back to the module's (B, S, H, D) layout (no data movement).
    return out2.reshape(B, S, H, D)


def _reference(x, Wq, bq, Wo, bo):
    """Pure-JAX mirror of the PyTorch forward (for verification)."""
    B, S, H, D = x.shape
    q = jnp.einsum("bshd,ed->bshe", x, Wq) + bq
    inv_freq = 1.0 / (10000.0 ** (jnp.arange(0, D, 2, dtype=jnp.float32) / D))
    ang = jnp.outer(jnp.arange(S, dtype=jnp.float32), inv_freq)   # (S, D//2)
    cos = jnp.cos(ang)[None, :, None, :]
    sin = jnp.sin(ang)[None, :, None, :]
    qr = q.reshape(B, S, H, D // 2, 2)
    qe, qo = qr[..., 0], qr[..., 1]
    q_rot = jnp.stack([qe * cos - qo * sin, qe * sin + qo * cos],
                      axis=-1).reshape(B, S, H, D)
    return jnp.einsum("bshd,ed->bshe", q_rot, Wo) + bo


if __name__ == "__main__":
    B, S, H, D = 2, 8, 4, 32        # batch, seq_len, heads, dim

    key = jax.random.PRNGKey(0)
    k1, k2, k3, k4, k5, k6, k7 = jax.random.split(key, 7)
    bound = 1.0 / (D ** 0.5)        # PyTorch nn.Linear default init range

    Wq = jax.random.uniform(k1, (D, D), jnp.float32, -bound, bound)
    bq = jax.random.uniform(k2, (D,), jnp.float32, -bound, bound)
    Wk = jax.random.uniform(k3, (D, D), jnp.float32, -bound, bound)  # defined by the module,
    bk = jax.random.uniform(k4, (D,), jnp.float32, -bound, bound)    # but unused by its output
    Wo = jax.random.uniform(k5, (D, D), jnp.float32, -bound, bound)
    bo = jax.random.uniform(k6, (D,), jnp.float32, -bound, bound)

    x = jax.random.normal(k7, (B, S, H, D), jnp.float32)

    out = rotary_attention_forward(x, Wq, bq, Wo, bo)
    jax.block_until_ready(out)

    ref = _reference(x, Wq, bq, Wo, bo)
    assert out.shape == (B, S, H, D)
    assert jnp.allclose(out, ref, atol=1e-3, rtol=1e-3), "mismatch vs reference"

    print("KERNEL_OK")
</pallas_src>

<mosaic_0001>
module attributes {stable_mosaic.version = 11 : i64} {
  func.func @_rotary_attn_kernel(%arg0: i32, %arg1: memref<8x128xf32, #tpu.memory_space<vmem>>, %arg2: memref<128x64xf32, #tpu.memory_space<vmem>>, %arg3: memref<128x64xf32, #tpu.memory_space<vmem>>, %arg4: memref<1x64xf32, #tpu.memory_space<vmem>>, %arg5: memref<1x64xf32, #tpu.memory_space<vmem>>, %arg6: memref<64x128xf32, #tpu.memory_space<vmem>>, %arg7: memref<64x128xf32, #tpu.memory_space<vmem>>, %arg8: memref<1x128xf32, #tpu.memory_space<vmem>>, %arg9: memref<8x64xf32, #tpu.memory_space<vmem>>, %arg10: memref<8x64xf32, #tpu.memory_space<vmem>>, %arg11: memref<8x128xf32, #tpu.memory_space<vmem>>) attributes {dimension_semantics = [#tpu.dimension_semantics<parallel>], iteration_bounds = array<i64: 2>, scalar_prefetch = 0 : i64, scratch_operands = 0 : i64, tpu.core_type = #tpu.core_type<tc>, window_params = [{transform_indices = @transform_0, window_bounds = array<i64: 8, 128>}, {pipeline_mode = #tpu.pipeline_mode<synchronous>, transform_indices = @transform_1, window_bounds = array<i64: 128, 64>}, {pipeline_mode = #tpu.pipeline_mode<synchronous>, transform_indices = @transform_2, window_bounds = array<i64: 128, 64>}, {pipeline_mode = #tpu.pipeline_mode<synchronous>, transform_indices = @transform_3, window_bounds = array<i64: 1, 64>}, {pipeline_mode = #tpu.pipeline_mode<synchronous>, transform_indices = @transform_4, window_bounds = array<i64: 1, 64>}, {pipeline_mode = #tpu.pipeline_mode<synchronous>, transform_indices = @transform_5, window_bounds = array<i64: 64, 128>}, {pipeline_mode = #tpu.pipeline_mode<synchronous>, transform_indices = @transform_6, window_bounds = array<i64: 64, 128>}, {pipeline_mode = #tpu.pipeline_mode<synchronous>, transform_indices = @transform_7, window_bounds = array<i64: 1, 128>}, {transform_indices = @transform_8, window_bounds = array<i64: 8, 64>}, {transform_indices = @transform_9, window_bounds = array<i64: 8, 64>}, {transform_indices = @transform_10, window_bounds = array<i64: 8, 128>}]} {
    %c0 = arith.constant 0 : index
    %c0_0 = arith.constant 0 : index
    %0 = vector.load %arg1[%c0, %c0_0] : memref<8x128xf32, #tpu.memory_space<vmem>>, vector<8x128xf32>
    %c0_1 = arith.constant 0 : index
    %c0_2 = arith.constant 0 : index
    %1 = vector.load %arg2[%c0_1, %c0_2] : memref<128x64xf32, #tpu.memory_space<vmem>>, vector<128x64xf32>
    %cst = arith.constant dense<0.000000e+00> : vector<8x64xf32>
    %2 = tpu.matmul %0, %1, %cst {dimension_numbers = #tpu.dot_dimension_numbers<[1], [0], [0], [1], [0, 0, 1, 1], [], []>} : vector<8x128xf32>, vector<128x64xf32>, vector<8x64xf32> -> vector<8x64xf32>
    %c0_3 = arith.constant 0 : index
    %c0_4 = arith.constant 0 : index
    %3 = vector.load %arg4[%c0_3, %c0_4] : memref<1x64xf32, #tpu.memory_space<vmem>>, vector<1x64xf32>
    %4 = vector.broadcast %3 : vector<1x64xf32> to vector<8x64xf32>
    %5 = arith.addf %2, %4 : vector<8x64xf32>
    %c0_5 = arith.constant 0 : index
    %c0_6 = arith.constant 0 : index
    %6 = vector.load %arg3[%c0_5, %c0_6] : memref<128x64xf32, #tpu.memory_space<vmem>>, vector<128x64xf32>
    %cst_7 = arith.constant dense<0.000000e+00> : vector<8x64xf32>
    %7 = tpu.matmul %0, %6, %cst_7 {dimension_numbers = #tpu.dot_dimension_numbers<[1], [0], [0], [1], [0, 0, 1, 1], [], []>} : vector<8x128xf32>, vector<128x64xf32>, vector<8x64xf32> -> vector<8x64xf32>
    %c0_8 = arith.constant 0 : index
    %c0_9 = arith.constant 0 : index
    %8 = vector.load %arg5[%c0_8, %c0_9] : memref<1x64xf32, #tpu.memory_space<vmem>>, vector<1x64xf32>
    %9 = vector.broadcast %8 : vector<1x64xf32> to vector<8x64xf32>
    %10 = arith.addf %7, %9 : vector<8x64xf32>
    %c0_10 = arith.constant 0 : index
    %c0_11 = arith.constant 0 : index
    %11 = vector.load %arg9[%c0_10, %c0_11] : memref<8x64xf32, #tpu.memory_space<vmem>>, vector<8x64xf32>
    %c0_12 = arith.constant 0 : index
    %c0_13 = arith.constant 0 : index
    %12 = vector.load %arg10[%c0_12, %c0_13] : memref<8x64xf32, #tpu.memory_space<vmem>>, vector<8x64xf32>
    %13 = arith.mulf %5, %11 : vector<8x64xf32>
    %14 = arith.mulf %10, %12 : vector<8x64xf32>
    %15 = arith.subf %13, %14 : vector<8x64xf32>
    %16 = arith.mulf %5, %12 : vector<8x64xf32>
    %17 = arith.mulf %10, %11 : vector<8x64xf32>
    %18 = arith.addf %16, %17 : vector<8x64xf32>
    %c0_14 = arith.constant 0 : index
    %c0_15 = arith.constant 0 : index
    %19 = vector.load %arg6[%c0_14, %c0_15] : memref<64x128xf32, #tpu.memory_space<vmem>>, vector<64x128xf32>
    %cst_16 = arith.constant dense<0.000000e+00> : vector<8x128xf32>
    %20 = tpu.matmul %15, %19, %cst_16 {dimension_numbers = #tpu.dot_dimension_numbers<[1], [0], [0], [1], [0, 0, 1, 1], [], []>} : vector<8x64xf32>, vector<64x128xf32>, vector<8x128xf32> -> vector<8x128xf32>
    %c0_17 = arith.constant 0 : index
    %c0_18 = arith.constant 0 : index
    %21 = vector.load %arg7[%c0_17, %c0_18] : memref<64x128xf32, #tpu.memory_space<vmem>>, vector<64x128xf32>
    %cst_19 = arith.constant dense<0.000000e+00> : vector<8x128xf32>
    %22 = tpu.matmul %18, %21, %cst_19 {dimension_numbers = #tpu.dot_dimension_numbers<[1], [0], [0], [1], [0, 0, 1, 1], [], []>} : vector<8x64xf32>, vector<64x128xf32>, vector<8x128xf32> -> vector<8x128xf32>
    %23 = arith.addf %20, %22 : vector<8x128xf32>
    %c0_20 = arith.constant 0 : index
    %c0_21 = arith.constant 0 : index
    %24 = vector.load %arg8[%c0_20, %c0_21] : memref<1x128xf32, #tpu.memory_space<vmem>>, vector<1x128xf32>
    %25 = vector.broadcast %24 : vector<1x128xf32> to vector<8x128xf32>
    %26 = arith.addf %23, %25 : vector<8x128xf32>
    %c0_22 = arith.constant 0 : index
    %c0_23 = arith.constant 0 : index
    %27 = vector.load %arg11[%c0_22, %c0_23] : memref<8x128xf32, #tpu.memory_space<vmem>>, vector<8x128xf32>
    tpu.vector_store %arg11[%c0_22, %c0_23], %26 {strides = array<i32>} : memref<8x128xf32, #tpu.memory_space<vmem>>, vector<8x128xf32>,
    return
  }
  func.func @transform_0(%arg0: i32) -> (i32, i32) {
    %c0_i32 = arith.constant 0 : i32
    %c0_i32_0 = arith.constant 0 : i32
    return %arg0, %c0_i32 : i32, i32
  }
  func.func @transform_1(%arg0: i32) -> (i32, i32) {
    %c0_i32 = arith.constant 0 : i32
    %c0_i32_0 = arith.constant 0 : i32
    %c0_i32_1 = arith.constant 0 : i32
    return %c0_i32, %c0_i32_0 : i32, i32
  }
  func.func @transform_2(%arg0: i32) -> (i32, i32) {
    %c0_i32 = arith.constant 0 : i32
    %c0_i32_0 = arith.constant 0 : i32
    %c0_i32_1 = arith.constant 0 : i32
    return %c0_i32, %c0_i32_0 : i32, i32
  }
  func.func @transform_3(%arg0: i32) -> (i32, i32) {
    %c0_i32 = arith.constant 0 : i32
    %c0_i32_0 = arith.constant 0 : i32
    %c0_i32_1 = arith.constant 0 : i32
    return %c0_i32, %c0_i32_0 : i32, i32
  }
  func.func @transform_4(%arg0: i32) -> (i32, i32) {
    %c0_i32 = arith.constant 0 : i32
    %c0_i32_0 = arith.constant 0 : i32
    %c0_i32_1 = arith.constant 0 : i32
    return %c0_i32, %c0_i32_0 : i32, i32
  }
  func.func @transform_5(%arg0: i32) -> (i32, i32) {
    %c0_i32 = arith.constant 0 : i32
    %c0_i32_0 = arith.constant 0 : i32
    %c0_i32_1 = arith.constant 0 : i32
    return %c0_i32, %c0_i32_0 : i32, i32
  }
  func.func @transform_6(%arg0: i32) -> (i32, i32) {
    %c0_i32 = arith.constant 0 : i32
    %c0_i32_0 = arith.constant 0 : i32
    %c0_i32_1 = arith.constant 0 : i32
    return %c0_i32, %c0_i32_0 : i32, i32
  }
  func.func @transform_7(%arg0: i32) -> (i32, i32) {
    %c0_i32 = arith.constant 0 : i32
    %c0_i32_0 = arith.constant 0 : i32
    %c0_i32_1 = arith.constant 0 : i32
    return %c0_i32, %c0_i32_0 : i32, i32
  }
  func.func @transform_8(%arg0: i32) -> (i32, i32) {
    %c1_i32 = arith.constant 1 : i32
    %c0_i32 = arith.constant 0 : i32
    %0 = arith.cmpi eq, %c1_i32, %c0_i32 : i32
    %c1_i32_0 = arith.constant 1 : i32
    %1 = arith.select %0, %c1_i32_0, %c1_i32 : i32
    %2 = arith.remsi %arg0, %1 : i32
    %c0_i32_1 = arith.constant 0 : i32
    %3 = arith.cmpi ne, %2, %c0_i32_1 : i32
    %c0_i32_2 = arith.constant 0 : i32
    %4 = arith.cmpi slt, %2, %c0_i32_2 : i32
    %c0_i32_3 = arith.constant 0 : i32
    %5 = arith.cmpi slt, %1, %c0_i32_3 : i32
    %6 = arith.xori %4, %5 : i1
    %7 = arith.andi %6, %3 : i1
    %8 = arith.addi %2, %1 : i32
    %9 = arith.select %7, %8, %2 : i32
    %c0_i32_4 = arith.constant 0 : i32
    %c0_i32_5 = arith.constant 0 : i32
    return %9, %c0_i32_4 : i32, i32
  }
  func.func @transform_9(%arg0: i32) -> (i32, i32) {
    %c1_i32 = arith.constant 1 : i32
    %c0_i32 = arith.constant 0 : i32
    %0 = arith.cmpi eq, %c1_i32, %c0_i32 : i32
    %c1_i32_0 = arith.constant 1 : i32
    %1 = arith.select %0, %c1_i32_0, %c1_i32 : i32
    %2 = arith.remsi %arg0, %1 : i32
    %c0_i32_1 = arith.constant 0 : i32
    %3 = arith.cmpi ne, %2, %c0_i32_1 : i32
    %c0_i32_2 = arith.constant 0 : i32
    %4 = arith.cmpi slt, %2, %c0_i32_2 : i32
    %c0_i32_3 = arith.constant 0 : i32
    %5 = arith.cmpi slt, %1, %c0_i32_3 : i32
    %6 = arith.xori %4, %5 : i1
    %7 = arith.andi %6, %3 : i1
    %8 = arith.addi %2, %1 : i32
    %9 = arith.select %7, %8, %2 : i32
    %c0_i32_4 = arith.constant 0 : i32
    %c0_i32_5 = arith.constant 0 : i32
    return %9, %c0_i32_4 : i32, i32
  }
  func.func @transform_10(%arg0: i32) -> (i32, i32) {
    %c0_i32 = arith.constant 0 : i32
    %c0_i32_0 = arith.constant 0 : i32
    return %arg0, %c0_i32 : i32, i32
  }
}

</mosaic_0001>

<bundles_post_ra>
// kernel: tpu_custom_call.1
= control target key start
LH: loop header
LB: loop body
LE: loop exit
PB: predicated region body
PF: predicated region fallthrough
CT: control target
= control target key end

     0   :  { %s1498_s0 = inlined_call_operand.vmem [shape: f32[16,128], index: 0, kind: input, shape index: {}]   ;;  %s1499_s1 = inlined_call_operand.vmem [shape: f32[128,64], index: 1, kind: input, shape index: {}]   ;;  %s1500_s2 = inlined_call_operand.vmem [shape: f32[128,64], index: 2, kind: input, shape index: {}]   ;;  %s1501_s3 = inlined_call_operand.vmem [shape: f32[1,64], index: 3, kind: input, shape index: {}]   ;;  %s1502_s4 = inlined_call_operand.vmem [shape: f32[1,64], index: 4, kind: input, shape index: {}]   ;;  %s1503_s5 = inlined_call_operand.vmem [shape: f32[64,128], index: 5, kind: input, shape index: {}]   ;;  %s1504_s6 = inlined_call_operand.vmem [shape: f32[64,128], index: 6, kind: input, shape index: {}]   ;;  %s1505_s7 = inlined_call_operand.vmem [shape: f32[1,128], index: 7, kind: input, shape index: {}]   ;;  %s1506_s8 = inlined_call_operand.vmem [shape: f32[8,64], index: 8, kind: input, shape index: {}]   ;;  %s1507_s9 = inlined_call_operand.vmem [shape: f32[8,64], index: 9, kind: input, shape index: {}]   ;;  %s1508_s10 = inlined_call_operand.hbm [shape: f32[16,128], index: 10, kind: output, shape index: {}]  }
   0x1   :  { %1509 = sst [smem:[#allocation5_spill]] %s1499_s1 }
   0x2   :  { %15 = vsyncpa [#allocation3], 0 }
   0x3   :  { %17 = vsyncpa [#allocation3 + $0x1], 0  ;;  %s1207_s13 = smov 0   ;;  %s1209_s14 = smov 0  }
   0x4   :  { %s1211_s15 = smov 0   ;;  %s1213_s16 = smov 0  }
   0x5 LB: > { %s1228_s17 = sadd.s32 4294967295, %s1146_s16   ;;  %s795_s18 = sadd.s32 4294967294, %s1146_s16   ;;  %s1146_s16 = sphi %s1213_s16, %s1516_s16   ;;  %s1142_s15 = sphi %s1211_s15, %s1515_s15   ;;  %s1138_s14 = sphi %s1209_s14, %s1514_s14   ;;  %s1134_s13 = sphi %s1207_s13, %s1513_s13  }
   0x6   : > { %s1232_s19 = sadd.s32 1, %s1146_s16   ;;  %s245_s20 = sadd.s32 1, %s1142_s15 }
   0x7   : > { %s242_s21 = ssub.s32 %s1146_s16, %s1232_s19  ;;  %p255_p0 = scmp.ne.s32.totalorder %s1142_s15, %s1138_s14 }
   0x8   : > { %p243_p1 = scmp.eq.s32.totalorder %s242_s21, 0  ;;  %p256_p2 = scmp.eq.s32.totalorder %s1228_s17, 1 }
   0x9   : > { %p261_p3 = scmp.ne.s32.totalorder %s1138_s14, %s1134_s13  ;;  %p262_p4 = scmp.eq.s32.totalorder %s795_s18, 1 }
   0xa   : > { %s1243_s22 = scalar_select %p243_p1, %s1142_s15, %s245_s20  }
   0xb   : > { %p1245_p5 = por %p256_p2, %p255_p0  ;;  %p1249_p6 = por %p262_p4, %p261_p3 }
   0xc   : > { %p798_p7 = scmp.ge.s32.totalorder %s1146_s16, 1  ;;  %p314_p8 = scmp.lt.s32.totalorder %s1146_s16, 3 }
   0xe   : > { %p315_p9 = pnand %p798_p7, %p314_p8 }
   0xf   : > { %s1512_s1 = sld [smem:[#allocation5_spill]] (!%p315_p9)  ;;  %v449_v2 = vld [vmem:[%s1500_s2] sm:$0xff] (!%p315_p9)  ;;  %v1148_v3 = vmov (!%p315_p9), 0.0|0.0   ;;  %v450_v5 = vld [vmem:[%s1500_s2 + $0x8] sm:$0xff] (!%p315_p9)  ;;  %v451_v9 = vld [vmem:[%s1500_s2 + $0x10] sm:$0xff] (!%p315_p9)  ;;  %vm1149_vm0 = vmmov (!%p315_p9), 0  }
  0x10   : > { %318 = sbr.rel (%p315_p9) target bundleno = 503 (0x1f7), region = 60  ;;  %970 = vmatprep.subr.bf16.mxu0 (!%p315_p9), %v1148_v3  ;;  %994 = vmatprep.subr.bf16.mxu1 (!%p315_p9), %v1148_v3  ;;  %v995_v8 = vpack.c.bf16 (!%p315_p9), %v450_v5, %v449_v2  ;;  %v452_v10 = vld [vmem:[%s1500_s2 + $0x18] sm:$0xff] (!%p315_p9)  ;;  %v1150_v11 = vmov (!%p315_p9), 0.0   ;;  %v453_v16 = vld [vmem:[%s1500_s2 + $0x20] sm:$0xff] (!%p315_p9)  ;;  %v454_v17 = vld [vmem:[%s1500_s2 + $0x28] sm:$0xff] (!%p315_p9)  ;;  %p351_p10 = scmp.lt.s32.totalorder (!%p315_p9), %s1228_s17, 1 }
  0x11   : > { %894 = vmatprep.mubr.msk.f32.mxu0 (!%p315_p9), %vm1149_vm0, %v1150_v11  ;;  %929 = vmatprep.mubr.msk.f32.mxu1 (!%p315_p9), %vm1149_vm0, %v1150_v11  ;;  %v998_v13 = vpack.c.bf16 (!%p315_p9), %v452_v10, %v451_v9  ;;  %v1001_v19 = vpack.c.bf16 (!%p315_p9), %v454_v17, %v453_v16  ;;  %v455_v22 = vld [vmem:[%s1500_s2 + $0x30] sm:$0xff] (!%p315_p9)  ;;  %v456_v23 = vld [vmem:[%s1500_s2 + $0x38] sm:$0xff] (!%p315_p9)  ;;  %v457_v28 = vld [vmem:[%s1500_s2 + $0x40] sm:$0xff] (!%p315_p9)  ;;  %vm566_vm1 = vcmask (!%p315_p9), 523264   ;;  %s348_s12 = sand.u32 (!%p315_p9), 1, %s1138_s14  }
  0x12   : > { %996 = vmatpush3.bf16.msra.mxu1 (!%p315_p9), %v995_v8  ;;  %v1004_v25 = vpack.c.bf16 (!%p315_p9), %v456_v23, %v455_v22  ;;  %v458_v29 = vld [vmem:[%s1500_s2 + $0x48] sm:$0xff] (!%p315_p9)  ;;  %v459_v34 = vld [vmem:[%s1500_s2 + $0x50] sm:$0xff] (!%p315_p9)  ;;  %v460_v35 = vld [vmem:[%s1500_s2 + $0x58] sm:$0xff] (!%p315_p9) }
  0x13   : > { %997 = vmatprep.subr.bf16.mxu1 (!%p315_p9), %v1148_v3  ;;  %v1007_v31 = vpack.c.bf16 (!%p315_p9), %v458_v29, %v457_v28  ;;  %v1010_v37 = vpack.c.bf16 (!%p315_p9), %v460_v35, %v459_v34  ;;  %v461_v40 = vld [vmem:[%s1500_s2 + $0x60] sm:$0xff] (!%p315_p9)  ;;  %v462_v41 = vld [vmem:[%s1500_s2 + $0x68] sm:$0xff] (!%p315_p9)  ;;  %v463_v46 = vld [vmem:[%s1500_s2 + $0x70] sm:$0xff] (!%p315_p9) }
  0x14   : > { %v1013_v43 = vpack.c.bf16 (!%p315_p9), %v462_v41, %v461_v40  ;;  %v464_v47 = vld [vmem:[%s1500_s2 + $0x78] sm:$0xff] (!%p315_p9)  ;;  %v558_v50 = vld [vmem:[%s1504_s6] sm:$0xff] (!%p315_p9)  ;;  %v559_v51 = vld [vmem:[%s1504_s6 + $0x8] sm:$0xff] (!%p315_p9) }
  0x15   : > { %v356_v0 = vld [vmem:[%s1512_s1] sm:$0xff] (!%p315_p9)  ;;  %v357_v1 = vld [vmem:[%s1512_s1 + $0x8] sm:$0xff] (!%p315_p9)  ;;  %v358_v6 = vld [vmem:[%s1512_s1 + $0x10] sm:$0xff] (!%p315_p9)  ;;  %v1016_v49 = vpack.c.bf16 (!%p315_p9), %v464_v47, %v463_v46  ;;  %v1019_v55 = vpack.c.bf16 (!%p315_p9), %v559_v51, %v558_v50 }
  0x16   : > { %v971_v4 = vpack.c.bf16 (!%p315_p9), %v357_v1, %v356_v0  ;;  %v359_v7 = vld [vmem:[%s1512_s1 + $0x18] sm:$0xff] (!%p315_p9)  ;;  %v360_v14 = vld [vmem:[%s1512_s1 + $0x20] sm:$0xff] (!%p315_p9)  ;;  %v361_v15 = vld [vmem:[%s1512_s1 + $0x28] sm:$0xff] (!%p315_p9)  ;;  %999 = vmatpush3.bf16.msra.mxu1 (!%p315_p9), %v998_v13 }
  0x17   : > { %v974_v12 = vpack.c.bf16 %v359_v7, %v358_v6  ;;  %v977_v18 = vpack.c.bf16 %v361_v15, %v360_v14  ;;  %v362_v20 = vld [vmem:[%s1512_s1 + $0x30] sm:$0xff]  ;;  %v363_v21 = vld [vmem:[%s1512_s1 + $0x38] sm:$0xff]  ;;  %1000 = vmatprep.subr.bf16.mxu1 %v1148_v3  ;;  %v364_v26 = vld [vmem:[%s1512_s1 + $0x40] sm:$0xff]  ;;  %s352_s26 = scalar_select %p351_p10, %s1228_s17, 1 }
  0x18   : > { %972 = vmatpush3.bf16.msra.mxu0 %v971_v4  ;;  %v980_v24 = vpack.c.bf16 %v363_v21, %v362_v20  ;;  %v365_v27 = vld [vmem:[%s1512_s1 + $0x48] sm:$0xff]  ;;  %v366_v32 = vld [vmem:[%s1512_s1 + $0x50] sm:$0xff]  ;;  %v367_v33 = vld [vmem:[%s1512_s1 + $0x58] sm:$0xff] }
  0x19   : > { %973 = vmatprep.subr.bf16.mxu0 %v1148_v3  ;;  %v983_v30 = vpack.c.bf16 %v365_v27, %v364_v26  ;;  %v986_v36 = vpack.c.bf16 %v367_v33, %v366_v32  ;;  %v368_v38 = vld [vmem:[%s1512_s1 + $0x60] sm:$0xff]  ;;  %v369_v39 = vld [vmem:[%s1512_s1 + $0x68] sm:$0xff]  ;;  %v370_v44 = vld [vmem:[%s1512_s1 + $0x70] sm:$0xff]  ;;  %s800_s21 = sshll.u32 %s352_s26, 3  ;;  %s799_s26 = sshll.u32 %s348_s12, 3 }
  0x1a   : > { %1002 = vmatpush3.bf16.msra.mxu1 %v1001_v19  ;;  %v989_v42 = vpack.c.bf16 %v369_v39, %v368_v38  ;;  %v371_v45 = vld [vmem:[%s1512_s1 + $0x78] sm:$0xff]  ;;  %s354_s28 = scalar_lea.vmem %s1498_s0, %s800_s21  ;;  %v550_v52 = vld [vmem:[%s1503_s5] sm:$0xff]  ;;  %v551_v53 = vld [vmem:[%s1503_s5 + $0x8] sm:$0xff]  ;;  %s807_s21 = sshll.u32 %s1228_s17, 7 }
  0x1b   : > { %1003 = vmatprep.subr.bf16.mxu1 %v1148_v3  ;;  %v992_v48 = vpack.c.bf16 %v371_v45, %v370_v44  ;;  %v355_v54 = vld [vmem:[%s354_s28] sm:$0xff]  ;;  %v1031_v56 = vpack.c.bf16 %v551_v53, %v550_v52  ;;  %v560_v57 = vld [vmem:[%s1504_s6 + $0x10] sm:$0xff]  ;;  %v561_v58 = vld [vmem:[%s1504_s6 + $0x18] sm:$0xff]  ;;  %s350_s25 = scalar_lea.vmem [#allocation2], %s799_s26  ;;  %s1456_s1 = scalar_lea.hbm %s1508_s10, %s807_s21 }
  0x1c   : > { %975 = vmatpush3.bf16.msra.mxu0 %v974_v12  ;;  %v552_v59 = vld [vmem:[%s1503_s5 + $0x10] sm:$0xff]  ;;  %v553_v60 = vld [vmem:[%s1503_s5 + $0x18] sm:$0xff]  ;;  %v1022_v61 = vpack.c.bf16 %v561_v58, %v560_v57  ;;  %v562_v63 = vld [vmem:[%s1504_s6 + $0x20] sm:$0xff]  ;;  %s736_s27 = sshll.u32 %s350_s25, 4  ;;  %s723_s28 = scalar_lea.sflag [#allocation3], %s348_s12  ;;  %s1458_s27 = int_to_ptr.vmem [resolvable:$true] %s736_s27 }
  0x1d   : > { %976 = vmatprep.subr.bf16.mxu0 %v1148_v3  ;;  %v1034_v62 = vpack.c.bf16 %v553_v60, %v552_v59  ;;  %v563_v0 = vld [vmem:[%s1504_s6 + $0x28] sm:$0xff]  ;;  %v554_v1 = vld [vmem:[%s1503_s5 + $0x20] sm:$0xff]  ;;  %v564_v6 = vld [vmem:[%s1504_s6 + $0x30] sm:$0xff]  ;;  %s1084_s11 = scalar_lea.vmem %s1458_s27, 128  ;;  %s1151_s17 = smov [#allocation2]  }
  0x1e   : > { %1005 = vmatpush3.bf16.msra.mxu1 %v1004_v25  ;;  %v1025_v2 = vpack.c.bf16 %v563_v0, %v562_v63  ;;  %v555_v4 = vld [vmem:[%s1503_s5 + $0x28] sm:$0xff]  ;;  %v565_v7 = vld [vmem:[%s1504_s6 + $0x38] sm:$0xff]  ;;  %v556_v8 = vld [vmem:[%s1503_s5 + $0x30] sm:$0xff]  ;;  %p1085_p11 = scmp.ne.s32.totalorder %s1458_s27, %s1084_s11  ;;  %s1088_s26 = sshll.u32 %s1151_s17, 4  ;;  %s1089_s26 = int_to_ptr.vmem [resolvable:$false] %s1088_s26 }
  0x1f   : > { %1006 = vmatprep.subr.bf16.mxu1 %v1148_v3  ;;  %v1037_v5 = vpack.c.bf16 %v555_v4, %v554_v1  ;;  %v1028_v9 = vpack.c.bf16 %v565_v7, %v564_v6  ;;  %v557_v10 = vld [vmem:[%s1503_s5 + $0x38] sm:$0xff]  ;;  %v801_v12 = vld [vmem:[%s1501_s3] ss:$0 sm:$0xff]  ;;  %s1090_s18 = scalar_lea.vmem %s1089_s26, 256  ;;  %p1091_p0 = scmp.lt.s32.totalorder %s1458_s27, %s1089_s26 }
  0x20   : > { %978 = vmatpush3.bf16.msra.mxu0 %v977_v18  ;;  %v802_v13 = vld [vmem:[%s1502_s4] ss:$0 sm:$0xff]  ;;  %p1086_p12 = pnand %p1085_p11, %p1245_p5  ;;  %p1092_p1 = scmp.lt.s32.totalorder %s1090_s18, %s1084_s11 }
  0x21   : > { %979 = vmatprep.subr.bf16.mxu0 %v1148_v3  ;;  %v543_v15 = vld [vmem:[%s1507_s9] sm:$0xff] }
  0x22   : > { %1008 = vmatpush3.bf16.msra.mxu1 %v1007_v31  ;;  %v805_v29 = vld [vmem:[%s1505_s7] ss:$0 sm:$0xff]  ;;  %p1087_p13 = pneg %p1086_p12  ;;  %p1093_p2 = por %p1092_p1, %p1091_p0 }
  0x23   : > { %1009 = vmatprep.subr.bf16.mxu1 %v1148_v3 }
  0x24   : > { %981 = vmatpush3.bf16.msra.mxu0 %v980_v24  ;;  %p1094_p3 = pnand %p1093_p2, %p1087_p13 }
  0x25   : > { %982 = vmatprep.subr.bf16.mxu0 %v1148_v3 }
  0x26   : > { %1011 = vmatpush3.bf16.msra.mxu1 %v1010_v37 }
  0x27   : > { %1012 = vmatprep.subr.bf16.mxu1 %v1148_v3 }
  0x28   : > { %984 = vmatpush3.bf16.msra.mxu0 %v983_v30 }
  0x29   : > { %985 = vmatprep.subr.bf16.mxu0 %v1148_v3 }
  0x2a   : > { %1014 = vmatpush3.bf16.msra.mxu1 %v1013_v43 }
  0x2b   : > { %1015 = vmatprep.subr.bf16.mxu1 %v1148_v3 }
  0x2c   : > { %987 = vmatpush3.bf16.msra.mxu0 %v986_v36 }
  0x2d   : > { %988 = vmatprep.subr.bf16.mxu0 %v1148_v3 }
  0x2e   : > { %1017 = vmatpush3.bf16.msra.mxu1 %v1016_v49 }
  0x2f   : > { %1030 = vmatprep.subr.bf16.mxu1 %v1148_v3 }
  0x30   : > { %990 = vmatpush3.bf16.msra.mxu0 %v989_v42 }
  0x31   : > { %991 = vmatprep.subr.bf16.mxu0 %v1148_v3  ;;  %930 = vmatmul.mubr.f32.vlgmr.msra.gmra.mrb[0].mxu1 %v355_v54 }
  0x32   : > { %1032 = vmatpush3.bf16.msra.mxu1 %v1031_v56  ;;  %967 = vmatprep.mubr.msk.f32.mxu1 %vm1149_vm0, %v1150_v11 }
  0x33   : > { %1033 = vmatprep.subr.bf16.mxu1 %v1148_v3 }
  0x34   : > { %993 = vmatpush3.bf16.msra.mxu0 %v992_v48 }
  0x35   : > { %1018 = vmatprep.subr.bf16.mxu0 %v1148_v3 }
  0x36   : > { %1035 = vmatpush3.bf16.msra.mxu1 %v1034_v62 }
  0x37   : > { %895 = vmatmul.mubr.f32.vlgmr.msra.gmra.mrb[0].mxu0 %v355_v54  ;;  %1036 = vmatprep.subr.bf16.mxu1 %v1148_v3 }
  0x38   : > { %1020 = vmatpush3.bf16.msra.mxu0 %v1019_v55  ;;  %948 = vmatprep.mubr.msk.f32.mxu0 %vm1149_vm0, %v1150_v11  ;;  %v1040_v11 = vpack.c.bf16 %v557_v10, %v556_v8 }
  0x39   : > { %1021 = vmatprep.subr.bf16.mxu0 %v1148_v3 }
  0x3a   : > { %1038 = vmatpush3.bf16.msra.mxu1 %v1037_v5 }
  0x3b   : > { %1039 = vmatprep.subr.bf16.mxu1 %v1148_v3 }
  0x3c   : > { %1023 = vmatpush3.bf16.msra.mxu0 %v1022_v61 }
  0x3d   : > { %1024 = vmatprep.subr.bf16.mxu0 %v1148_v3 }
  0x3e   : > { %1041 = vmatpush3.bf16.msra.mxu1 %v1040_v11 }
  0x40   : > { %1026 = vmatpush3.bf16.msra.mxu0 %v1025_v2 }
  0x41   : > { %1027 = vmatprep.subr.bf16.mxu0 %v1148_v3  ;;  %v542_v3 = vld [vmem:[%s1506_s8] sm:$0xff] }
  0x44   : > { %1029 = vmatpush3.bf16.msra.mxu0 %v1028_v9 }
 0x104   : > { %v538_v17 = vpop.f32.mrb[0].mxu1 }
 0x105   : > { %v539_v19 = vadd.f32 %v802_v13, %v538_v17  ;;  %v931_v20 = vpop.f32.mrb[1].mxu1 }
 0x107   : > { %v545_v23 = vmul.f32 %v543_v15, %v539_v19  ;;  %v548_v24 = vmul.f32 %v542_v3, %v539_v19 }
 0x10a   : > { %v445_v14 = vpop.f32.mrb[0].mxu0 }
 0x10b   : > { %v446_v16 = vadd.f32 %v801_v12, %v445_v14  ;;  %v896_v18 = vpop.f32.mrb[1].mxu0 }
 0x10d   : > { %v544_v21 = vmul.f32 %v542_v3, %v446_v16  ;;  %v547_v22 = vmul.f32 %v543_v15, %v446_v16 }
 0x10f   : > { %v546_v25 = vsub.f32 %v544_v21, %v545_v23  ;;  %v549_v26 = vadd.f32 %v548_v24, %v547_v22 }
 0x111   : > { %949 = vmatmul.mubr.msk.f32.vlgmr.msra.gmra.mrb[2].mxu0 %vm566_vm1, %v549_v26  ;;  %968 = vmatmul.mubr.msk.f32.vlgmr.msra.gmra.mrb[2].mxu1 %vm566_vm1, %v546_v25 }
 0x1e4   : > { %v636_v27 = vpop.f32.mrb[2].mxu0  ;;  %v709_v28 = vpop.f32.mrb[2].mxu1 }
 0x1e5   : > { %v710_v30 = vadd.f32 %v709_v28, %v636_v27  ;;  %v950_v31 = vpop.f32.mrb[3].mxu0  ;;  %v969_v32 = vpop.f32.mrb[3].mxu1 }
 0x1e7   : > { %v720_v33 = vadd.f32 %v805_v29, %v710_v30 }
 0x1e9   : > { %721 = vst [vmem:[%s350_s25] sm:$0xff] %v720_v33 }
 0x1ea   : > { %1097 = shalt.err (!%p1094_p3)
}
 0x1eb   : > { %s1098_s12 = scalar_lea.hbm %s1456_s1, 128  ;;  %s1102_s25 = scalar_lea.hbm %s1508_s10, 256 }
 0x1ec   : > { %p1099_p4 = scmp.ne.s32.totalorder %s1456_s1, %s1098_s12  ;;  %p1103_p9 = scmp.lt.u32.totalorder %s1456_s1, %s1508_s10 }
 0x1ed   : > { %p1104_p10 = scmp.lt.u32.totalorder %s1102_s25, %s1098_s12  ;;  %p1106_p12 = scmp.lt.u32.totalorder %s1098_s12, %s1456_s1 }
 0x1ee   : > { %p1100_p7 = pnand %p1099_p4, %p1245_p5 }
 0x1ef   : > { %p1105_p11 = por %p1104_p10, %p1103_p9 }
 0x1f0   : > { %p1101_p8 = pneg %p1100_p7 }
 0x1f1   : > { %p1107_p13 = por %p1106_p12, %p1105_p11 }
 0x1f3   : > { %p1108_p0 = pnand %p1107_p13, %p1101_p8 }
 0x1f5   : > { %1111 = shalt.err (!%p1108_p0)
}
 0x1f6   : > { %1042 = dma.vmem_to_hbm [thread:$0]  (%p1245_p5), %s1458_s27, 128, %s1456_s1, %s723_s28  }
 0x1f7 PF: > { %p1048_p1 = scmp.ge.s32.totalorder %s1146_s16, 2  ;;  %s748_s11 = sand.u32 1, %s1134_s13  }
 0x1f8   : > { %s749_s17 = scalar_lea.sflag [#allocation3], %s748_s11 }
 0x1f9   : > { %p1045_p2 = pnand %p1048_p1, %p1249_p6 }
 0x1fb   : > { %1129 = dma.done.wait (!%p1045_p2), %s749_s17, 128  }
 0x1fc   : > { %1131 = vsyncadd (!%p1045_p2), %s749_s17, 4294967168  ;;  %p20_p3 = scmp.ge.s32.totalorder %s1232_s19, 4   ;;  %s1513_s13 = smov %s1138_s14 }
 0x1fd   : > { %s1514_s14 = smov %s1142_s15  ;;  %s1515_s15 = smov %s1243_s22 }
 0x1fe   : > { %s1516_s16 = smov %s1232_s19  ;;  %22 = sbr.rel (!%p20_p3) target bundleno = 5 (0x5), region = 95 }
 0x205   :  { %754 = vsyncpa [#allocation3], 1 }
 0x206   :  { %756 = vsyncpa [#allocation3 + $0x1], 1 }

</bundles_post_ra>
